<compile_context>
chip_gen: v7x
topology: tpu7x:2x2x1
jax: 0.10.0
libtpu: 0.0.40
codegen_flags: <defaults>
</compile_context>

<pallas_src>
import functools
import math

import jax
import jax.numpy as jnp
from jax.experimental import pallas as pl
from jax.experimental.pallas import tpu as pltpu

_EPS = 1e-5


def _round_up(x, m):
    return ((x + m - 1) // m) * m


def _chip_plan():
    """(vmem_limit_bytes, max M tile) per chip generation."""
    try:
        vmem = int(pltpu.get_tpu_info().vmem_capacity_bytes)
    except Exception:
        vmem = 64 * 1024 * 1024             # conservative (v7x-sized) fallback
    if vmem >= 96 * 1024 * 1024:            # v5e / v6e: 128 MiB physical VMEM
        return 96 * 1024 * 1024, 1024
    return 48 * 1024 * 1024, 512            # v7x: 64 MiB physical VMEM


_VMEM_LIMIT, _TM_MAX = _chip_plan()
_CP = pltpu.CompilerParams(dimension_semantics=("parallel",),
                           vmem_limit_bytes=_VMEM_LIMIT)


def _pick_tm(m):
    """M tile: 16-row aligned (bf16 sublane packing); keep >= 2 grid steps when
    there is enough work so the 'parallel' M axis shards across both v7x cores
    (harmless extra step on single-core chips)."""
    tm = min(_TM_MAX, _round_up(m, 16))
    if m >= 32:
        tm = min(tm, _round_up((m + 1) // 2, 16))
    return tm


# ----------------------------------------------------------------------------
# Pallas kernels
# ----------------------------------------------------------------------------
def _matmul_stats_kernel(a_ref, w_ref, y_ref, s_ref):
    """bf16 MXU matmul for one M tile (full K) + the two live BN statistic rows."""
    y = jnp.dot(a_ref[...], w_ref[...], preferred_element_type=jnp.float32)
    y_ref[...] = y.astype(y_ref.dtype)
    s_ref[...] = jnp.concatenate(
        [jnp.sum(y, axis=0, keepdims=True),
         jnp.sum(y * y, axis=0, keepdims=True)], axis=0)[None]


def _bn_kernel(y_ref, sc_ref, sh_ref, o_ref, *, relu):
    y = y_ref[...].astype(jnp.float32) * sc_ref[...] + sh_ref[...]
    if relu:
        y = jnp.maximum(y, 0.0)
    o_ref[...] = y.astype(o_ref.dtype)


def _bn_res_kernel(y_ref, sc_ref, sh_ref, r_ref, o_ref):
    # NOTE: always applies ReLU (ResNet basic-block semantics; relu flag unused here).
    y = y_ref[...].astype(jnp.float32) * sc_ref[...] + sh_ref[...]
    o_ref[...] = jnp.maximum(y + r_ref[...].astype(jnp.float32), 0.0).astype(o_ref.dtype)


def _bn_ds_kernel(y_ref, sc_ref, sh_ref, yd_ref, scd_ref, shd_ref, o_ref):
    # Fused main-path BN + downsample-path BN + add + ReLU.
    y = y_ref[...].astype(jnp.float32) * sc_ref[...] + sh_ref[...]
    d = yd_ref[...].astype(jnp.float32) * scd_ref[...] + shd_ref[...]
    o_ref[...] = jnp.maximum(y + d, 0.0).astype(o_ref.dtype)


def _maxpool9_kernel(w0, w1, w2, w3, w4, w5, w6, w7, w8, o_ref):
    m01 = jnp.maximum(w0[...], w1[...])
    m23 = jnp.maximum(w2[...], w3[...])
    m45 = jnp.maximum(w4[...], w5[...])
    m67 = jnp.maximum(w6[...], w7[...])
    o_ref[...] = jnp.maximum(jnp.maximum(jnp.maximum(m01, m23),
                                         jnp.maximum(m45, m67)), w8[...])


# ----------------------------------------------------------------------------
# Glue: im2col patch extraction (plain JAX, bf16, padding folded in)
# ----------------------------------------------------------------------------
def _im2col(x_nhwc, kh, kw, stride, padding, m_pad, k_pad):
    # TODO(synk): patches are still HBM-materialized (kh*kw blow-up); a direct
    # window kernel (halo DMA / per-tap accumulation from an NHWC VMEM tile)
    # would remove this remaining traffic source.
    n, h, w, cin = x_nhwc.shape
    ho = (h + 2 * padding - kh) // stride + 1
    wo = (w + 2 * padding - kw) // stride + 1
    xp = jnp.pad(x_nhwc, ((0, 0), (padding, padding), (padding, padding), (0, 0)))
    cols = []
    for dy in range(kh):
        for dx in range(kw):
            cols.append(jax.lax.slice(
                xp, (0, dy, dx, 0),
                (n, dy + stride * (ho - 1) + 1, dx + stride * (wo - 1) + 1, cin),
                (1, stride, stride, 1)))
    k = kh * kw * cin
    m = n * ho * wo
    patches = jnp.concatenate(cols, axis=-1).reshape(m, k)
    patches = jnp.pad(patches, ((0, m_pad - m), (0, k_pad - k)))
    return patches.astype(jnp.bfloat16)


# ----------------------------------------------------------------------------
# Conv pass 1: tiled MXU matmul + exact BN statistics -> folded scale/shift
# ----------------------------------------------------------------------------
def conv_matmul_stats(x_nhwc, conv, *, stride, padding):
    kh, kw, cout = conv["kh"], conv["kw"], conv["cout"]
    k_pad, c_pad = conv["w"].shape
    n, h, w, _ = x_nhwc.shape
    ho = (h + 2 * padding - kh) // stride + 1
    wo = (w + 2 * padding - kw) // stride + 1
    m = n * ho * wo
    tm = _pick_tm(m)
    m_pad = _round_up(m, tm)
    grid_m = m_pad // tm
    a = _im2col(x_nhwc, kh, kw, stride, padding, m_pad, k_pad)

    y, stats = pl.pallas_call(
        _matmul_stats_kernel,
        grid=(grid_m,),
        in_specs=[pl.BlockSpec((tm, k_pad), lambda i: (i, 0)),
                  pl.BlockSpec((k_pad, c_pad), lambda i: (0, 0))],   # resident weight
        out_specs=[pl.BlockSpec((tm, c_pad), lambda i: (i, 0)),
                   pl.BlockSpec((1, 2, c_pad), lambda i: (i, 0, 0))],
        out_shape=[jax.ShapeDtypeStruct((m_pad, c_pad), jnp.bfloat16),
                   jax.ShapeDtypeStruct((grid_m, 2, c_pad), jnp.float32)],
        compiler_params=_CP,
        cost_estimate=pl.CostEstimate(
            flops=2 * m_pad * k_pad * c_pad,
            transcendentals=0,
            bytes_accessed=(m_pad * k_pad + k_pad * c_pad + m_pad * c_pad) * 2
            + grid_m * 2 * c_pad * 4),
    )(a, conv["w"])

    # Reduce stats, fold train-mode BN into one scale/shift per channel (tiny XLA).
    ssum = jnp.sum(stats[:, 0, :], axis=0)
    ssq = jnp.sum(stats[:, 1, :], axis=0)
    mean = ssum / m
    # TODO(synk): E[y^2]-E[y]^2 in f32 is cancellation-prone when |mean| >> std;
    # a shifted / Welford-style combine would be more robust.
    var = jnp.maximum(ssq / m - mean * mean, 0.0)        # biased (training) variance
    scale = conv["gamma"] * jax.lax.rsqrt(var + _EPS)
    shift = conv["beta"] - mean * scale
    meta = dict(n=n, h=ho, w=wo, c=cout, c_pad=c_pad,
                m=m, m_pad=m_pad, tm=tm, grid_m=grid_m)
    return y, scale.reshape(1, c_pad), shift.reshape(1, c_pad), meta


# ----------------------------------------------------------------------------
# Conv pass 2: folded BN (+ residual or fused downsample BN) (+ ReLU), bf16 out
# ----------------------------------------------------------------------------
def _bn_apply(y, scale, shift, meta, *, relu=True, residual_flat=None, ds=None):
    tm, grid_m = meta["tm"], meta["grid_m"]
    c_pad, m_pad = meta["c_pad"], meta["m_pad"]
    tile = pl.BlockSpec((tm, c_pad), lambda i: (i, 0))
    vec = pl.BlockSpec((1, c_pad), lambda i: (0, 0))
    in_specs = [tile, vec, vec]
    args = [y, scale, shift]
    if ds is not None:
        yd, scd, shd = ds
        assert yd.shape == y.shape, (yd.shape, y.shape)
        in_specs += [tile, vec, vec]
        args += [yd, scd, shd]
        kern = _bn_ds_kernel
    elif residual_flat is not None:
        assert residual_flat.shape == y.shape, (residual_flat.shape, y.shape)
        in_specs.append(tile)
        args.append(residual_flat)
        kern = _bn_res_kernel
    else:
        kern = functools.partial(_bn_kernel, relu=relu)
    return pl.pallas_call(
        kern,
        grid=(grid_m,),
        in_specs=in_specs,
        out_specs=tile,
        out_shape=jax.ShapeDtypeStruct((m_pad, c_pad), jnp.bfloat16),
        compiler_params=_CP,
    )(*args)


def conv_bn(x_nhwc, conv, *, stride, padding, relu=True, residual_flat=None, ds=None):
    y, sc, sh, meta = conv_matmul_stats(x_nhwc, conv, stride=stride, padding=padding)
    flat = _bn_apply(y, sc, sh, meta, relu=relu, residual_flat=residual_flat, ds=ds)
    return dict(flat=flat, **meta)


def _to_nhwc(act):
    """Slice the padded flat activation back to NHWC (only where a conv's patch
    extraction needs the native channel width)."""
    x = act["flat"][:act["m"]]
    if act["c_pad"] != act["c"]:
        x = x[:, :act["c"]]
    return x.reshape(act["n"], act["h"], act["w"], act["c"])


# ----------------------------------------------------------------------------
# MaxPool2d (kernel=3, stride=2, padding=1): 9 window inputs, lane-dense, bf16
# ----------------------------------------------------------------------------
def maxpool2d(act, *, ksize=3, stride=2, padding=1):
    assert ksize == 3
    n, h, w, c_pad = act["n"], act["h"], act["w"], act["c_pad"]
    # Keep the stem's lane-dense padded 128-channel layout (extra channels are
    # exact zeros and pool to zeros), so the result is already in flat Act form.
    x = act["flat"][:act["m"]].reshape(n, h, w, c_pad)
    ho = (h + 2 * padding - ksize) // stride + 1
    wo = (w + 2 * padding - ksize) // stride + 1
    m = n * ho * wo
    tm = _pick_tm(m)
    m_pad = _round_up(m, tm)
    grid_m = m_pad // tm
    # PyTorch MaxPool2d pads with -inf implicitly.
    xp = jnp.pad(x, ((0, 0), (padding, padding), (padding, padding), (0, 0)),
                 constant_values=-jnp.inf)
    wins = []
    for dy in range(ksize):
        for dx in range(ksize):
            win = jax.lax.slice(
                xp, (0, dy, dx, 0),
                (n, dy + stride * (ho - 1) + 1, dx + stride * (wo - 1) + 1, c_pad),
                (1, stride, stride, 1)).reshape(m, c_pad)
            wins.append(jnp.pad(win, ((0, m_pad - m), (0, 0))))
    tile = pl.BlockSpec((tm, c_pad), lambda i: (i, 0))
    out = pl.pallas_call(
        _maxpool9_kernel,
        grid=(grid_m,),
        in_specs=[tile] * 9,
        out_specs=tile,
        out_shape=jax.ShapeDtypeStruct((m_pad, c_pad), jnp.bfloat16),
        compiler_params=_CP,
    )(*wins)
    return dict(flat=out, n=n, h=ho, w=wo, c=act["c"], c_pad=c_pad,
                m=m, m_pad=m_pad, tm=tm, grid_m=grid_m)


# ----------------------------------------------------------------------------
# ResNet (BasicBlock, expansion = 1)
# ----------------------------------------------------------------------------
def basic_block(act, blk):
    x = _to_nhwc(act)
    out1 = conv_bn(x, blk["c1"], stride=blk["stride"], padding=1, relu=True)
    x1 = _to_nhwc(out1)
    if blk["ds"] is None:
        # Identity residual: reuse the producer's padded flat bf16 buffer directly.
        return conv_bn(x1, blk["c2"], stride=1, padding=1,
                       residual_flat=act["flat"])
    # Downsample branch: 1x1 conv runs as pass-1 only; its BN is fused into the
    # main path's elementwise pass (saves a full M x C read+write per block).
    yd, scd, shd, _ = conv_matmul_stats(x, blk["ds"], stride=blk["stride"], padding=0)
    return conv_bn(x1, blk["c2"], stride=1, padding=1, ds=(yd, scd, shd))


def resnet34_forward(x_nchw, params):
    x = jnp.transpose(x_nchw, (0, 2, 3, 1)).astype(jnp.bfloat16)   # NCHW -> NHWC, bf16
    act = conv_bn(x, params["stem"], stride=2, padding=3, relu=True)
    act = maxpool2d(act, ksize=3, stride=2, padding=1)
    for layer in params["layers"]:
        for blk in layer:
            act = basic_block(act, blk)
    out = _to_nhwc(act).astype(jnp.float32)      # slice padding off once, at the end
    return jnp.transpose(out, (0, 3, 1, 2))      # back to NCHW


# ----------------------------------------------------------------------------
# Parameters: weights pre-reshaped to (kh*kw*Cin, Cout), pre-padded, bf16
# ----------------------------------------------------------------------------
def _prep_conv(key, cout, cin, k):
    std = math.sqrt(2.0 / (k * k * cout))          # same init law as the module
    w = std * jax.random.normal(key, (cout, cin, k, k), jnp.float32)
    kdim = k * k * cin
    k_pad = _round_up(kdim, 128)
    c_pad = _round_up(cout, 128)
    wmat = jnp.transpose(w, (2, 3, 1, 0)).reshape(kdim, cout)      # (K, Cout)
    wmat = jnp.pad(wmat, ((0, k_pad - kdim), (0, c_pad - cout))).astype(jnp.bfloat16)
    return {
        "w": wmat, "kh": k, "kw": k, "cin": cin, "cout": cout,
        "gamma": jnp.ones((c_pad,), jnp.float32),      # BN init: weight=1
        "beta": jnp.zeros((c_pad,), jnp.float32),      # BN init: bias=0
    }


def make_params(key, layers=(1, 1, 1, 1)):
    keys = iter(jax.random.split(key, 256))
    params = {"stem": _prep_conv(next(keys), 64, 3, 7), "layers": []}
    inplanes = 64
    for planes, nblocks, stride in zip((64, 128, 256, 512), layers, (1, 2, 2, 2)):
        layer = []
        for bi in range(nblocks):
            s = stride if bi == 0 else 1
            blk = {
                "stride": s,
                "c1": _prep_conv(next(keys), planes, inplanes, 3),
                "c2": _prep_conv(next(keys), planes, planes, 3),
                "ds": None,
            }
            if s != 1 or inplanes != planes:
                blk["ds"] = _prep_conv(next(keys), planes, inplanes, 1)
            inplanes = planes
            layer.append(blk)
        params["layers"].append(layer)
    return params


if __name__ == "__main__":
    key = jax.random.PRNGKey(0)
    pkey, xkey = jax.random.split(key)

    # Small config consistent with the module: same channel widths (64..512),
    # same stem / stride pattern; layers=(1,1,1,1) keeps the script fast.
    # (The real ResNet34 uses layers=(3,4,6,3) — identical code path.)
    params = make_params(pkey, layers=(1, 1, 1, 1))

    x = jax.random.normal(xkey, (2, 3, 32, 32), jnp.float32)   # NCHW like PyTorch
    out = resnet34_forward(x, params)
    out = jax.block_until_ready(out)

    assert out.shape == (2, 512, 1, 1), out.shape
    assert bool(jnp.all(jnp.isfinite(out)))
    print("KERNEL_OK")
</pallas_src>

<mosaic_0001>
module attributes {stable_mosaic.version = 11 : i64} {
  func.func @_matmul_stats_kernel(%arg0: i32, %arg1: memref<256x256xbf16, #tpu.memory_space<vmem>>, %arg2: memref<256x128xbf16, #tpu.memory_space<vmem>>, %arg3: memref<256x128xbf16, #tpu.memory_space<vmem>>, %arg4: memref<1x2x128xf32, #tpu.memory_space<vmem>>) attributes {dimension_semantics = [#tpu.dimension_semantics<parallel>], iteration_bounds = array<i64: 2>, scalar_prefetch = 0 : i64, scratch_operands = 0 : i64, tpu.core_type = #tpu.core_type<tc>, window_params = [{transform_indices = @transform_0, window_bounds = array<i64: 256, 256>}, {pipeline_mode = #tpu.pipeline_mode<synchronous>, transform_indices = @transform_1, window_bounds = array<i64: 256, 128>}, {transform_indices = @transform_2, window_bounds = array<i64: 256, 128>}, {transform_indices = @transform_3, window_bounds = array<i64: 1, 2, 128>}]} {
    %c0 = arith.constant 0 : index
    %c0_0 = arith.constant 0 : index
    %0 = vector.load %arg1[%c0, %c0_0] : memref<256x256xbf16, #tpu.memory_space<vmem>>, vector<256x256xbf16>
    %c0_1 = arith.constant 0 : index
    %c0_2 = arith.constant 0 : index
    %1 = vector.load %arg2[%c0_1, %c0_2] : memref<256x128xbf16, #tpu.memory_space<vmem>>, vector<256x128xbf16>
    %cst = arith.constant dense<0.000000e+00> : vector<256x128xf32>
    %2 = tpu.matmul %0, %1, %cst {dimension_numbers = #tpu.dot_dimension_numbers<[1], [0], [0], [1], [0, 0, 1, 1], [], []>} : vector<256x256xbf16>, vector<256x128xbf16>, vector<256x128xf32> -> vector<256x128xf32>
    %3 = arith.truncf %2 : vector<256x128xf32> to vector<256x128xbf16>
    %c0_3 = arith.constant 0 : index
    %c0_4 = arith.constant 0 : index
    %4 = vector.load %arg3[%c0_3, %c0_4] : memref<256x128xbf16, #tpu.memory_space<vmem>>, vector<256x128xbf16>
    tpu.vector_store %arg3[%c0_3, %c0_4], %3 {strides = array<i32>} : memref<256x128xbf16, #tpu.memory_space<vmem>>, vector<256x128xbf16>,
    %cst_5 = arith.constant dense<0.000000e+00> : vector<128xf32>
    %5 = vector.multi_reduction <add>, %2, %cst_5 [0] : vector<256x128xf32> to vector<128xf32>
    %6 = vector.shape_cast %5 : vector<128xf32> to vector<1x128xf32>
    %7 = arith.mulf %2, %2 : vector<256x128xf32>
    %cst_6 = arith.constant dense<0.000000e+00> : vector<128xf32>
    %8 = vector.multi_reduction <add>, %7, %cst_6 [0] : vector<256x128xf32> to vector<128xf32>
    %9 = vector.shape_cast %8 : vector<128xf32> to vector<1x128xf32>
    %10 = tpu.concatenate %6, %9 in 0 : vector<1x128xf32>, vector<1x128xf32> -> vector<2x128xf32>
    %11 = vector.shape_cast %10 : vector<2x128xf32> to vector<1x2x128xf32>
    %c0_7 = arith.constant 0 : index
    %c0_8 = arith.constant 0 : index
    %c0_9 = arith.constant 0 : index
    %12 = vector.load %arg4[%c0_7, %c0_8, %c0_9] : memref<1x2x128xf32, #tpu.memory_space<vmem>>, vector<1x2x128xf32>
    tpu.vector_store %arg4[%c0_7, %c0_8, %c0_9], %11 {strides = array<i32>} : memref<1x2x128xf32, #tpu.memory_space<vmem>>, vector<1x2x128xf32>,
    return
  }
  func.func @transform_0(%arg0: i32) -> (i32, i32) {
    %c0_i32 = arith.constant 0 : i32
    %c0_i32_0 = arith.constant 0 : i32
    return %arg0, %c0_i32 : i32, i32
  }
  func.func @transform_1(%arg0: i32) -> (i32, i32) {
    %c0_i32 = arith.constant 0 : i32
    %c0_i32_0 = arith.constant 0 : i32
    %c0_i32_1 = arith.constant 0 : i32
    return %c0_i32, %c0_i32_0 : i32, i32
  }
  func.func @transform_2(%arg0: i32) -> (i32, i32) {
    %c0_i32 = arith.constant 0 : i32
    %c0_i32_0 = arith.constant 0 : i32
    return %arg0, %c0_i32 : i32, i32
  }
  func.func @transform_3(%arg0: i32) -> (i32, i32, i32) {
    %c0_i32 = arith.constant 0 : i32
    %c0_i32_0 = arith.constant 0 : i32
    %c0_i32_1 = arith.constant 0 : i32
    return %arg0, %c0_i32, %c0_i32_0 : i32, i32, i32
  }
}

</mosaic_0001>

<bundles_post_ra>
// kernel: tpu_custom_call.1
= control target key start
LH: loop header
LB: loop body
LE: loop exit
PB: predicated region body
PF: predicated region fallthrough
CT: control target
= control target key end

     0   :  { %9 = vsyncpa [#allocation3], 0  ;;  %s2180_s0 = inlined_call_operand.hbm [shape: bf16[512,256], index: 0, kind: input, shape index: {}]   ;;  %s2181_s1 = inlined_call_operand.hbm [shape: bf16[256,128], index: 1, kind: input, shape index: {}]   ;;  %s2182_s2 = inlined_call_operand.hbm [shape: bf16[512,128], index: 2, kind: output, shape index: {0}]   ;;  %s2183_s3 = inlined_call_operand.hbm [shape: f32[2,2,128], index: 3, kind: output, shape index: {1}]  }
   0x1   :  { %11 = vsyncpa [#allocation3 + $0x1], 0 }
   0x2   :  { %12 = vsyncpa [#allocation6], 0 }
   0x3   :  { %13 = vsyncpa [#allocation4], 0 }
   0x4   :  { %15 = vsyncpa [#allocation4 + $0x1], 0 }
   0x5   :  { %16 = vsyncpa [#allocation9], 0 }
   0x6   :  { %18 = vsyncpa [#allocation9 + $0x1], 0  ;;  %s1798_s12 = smov 0   ;;  %s1800_s13 = smov 0  }
   0x7   :  { %s1802_s14 = smov 0   ;;  %s1804_s15 = smov 0  }
   0x8 LB: > { %s1819_s16 = sadd.s32 4294967295, %s1766_s15   ;;  %s1116_s17 = sadd.s32 4294967294, %s1766_s15   ;;  %s1766_s15 = sphi %s1804_s15, %s2203_s15   ;;  %s1762_s14 = sphi %s1802_s14, %s2202_s14   ;;  %s1758_s13 = sphi %s1800_s13, %s2201_s13   ;;  %s1754_s12 = sphi %s1798_s12, %s2200_s12  }
   0x9   : > { %p44_p0 = scmp.ne.s32.totalorder %s1758_s13, %s1754_s12  ;;  %p2184_p1 = scmp.eq.s32.totalorder %s1819_s16, 0 }
   0xa   : > { %p95_p3 = scmp.eq.s32.totalorder %s1116_s17, 1  ;;  %p1117_p5 = scmp.ge.s32.totalorder %s1766_s15, 1 }
   0xb   : > { %p1828_p4 = por %p2184_p1, %p44_p0  ;;  %p128_p7 = scmp.lt.s32.totalorder %s1766_s15, 3 }
   0xc   : > { %p1833_p6 = por %p95_p3, %p44_p0  ;;  %s1768_s21 = smov [#allocation5]  }
   0xd   : > { %s2187_s18 = scalar_select %p1828_p4, 1, 0 }
   0xe   : > { %s2188_s19 = scalar_select %p1833_p6, 1, 0 }
   0xf   : > { %p1838_p8 = pnand %p1117_p5, %p128_p7  ;;  %s140_s22 = sshll.u32 %s1768_s21, 4  ;;  %s1842_s22 = int_to_ptr.vmem [resolvable:$true] %s140_s22 }
  0x10   : > { %s1854_s24 = sadd.s32 1, %s1766_s15   ;;  %s31_s25 = sadd.s32 1, %s1762_s14 }
  0x11   : > { %s2189_s20 = scalar_select %p1838_p8, 1, 0 }
  0x12   : > { %p1484_p9 = pneg %p1838_p8  ;;  %s28_s26 = ssub.s32 %s1766_s15, %s1854_s24 }
  0x13   : > { %s1606_s29 = scalar_lea.hbm %s2181_s1, 2048 }
  0x14   : > { %p1849_p11 = pnand %p1484_p9, %p2184_p1  ;;  %p1607_p12 = scmp.ne.s32.totalorder %s2181_s1, %s1606_s29 }
  0x15   : > { %p1613_p5 = scmp.lt.u32.totalorder %s1606_s29, %s2181_s1 }
  0x16   : > { %p1608_p13 = pneg %p1849_p11 }
  0x18   : > { %p1609_p0 = pnand %p1608_p13, %p1607_p12 }
  0x1a   : > { %p1610_p3 = pneg %p1609_p0 }
  0x1c   : > { %p1615_p7 = pnand %p1613_p5, %p1610_p3 }
  0x1e   : > { %1618 = shalt.err (!%p1615_p7)
}
  0x1f   : > { %s1619_s7 = scalar_lea.vmem %s1842_s22, 2048  ;;  %p1627_p2 = scmp.lt.s32.totalorder %s1842_s22, %s1842_s22 }
  0x20   : > { %p1620_p9 = scmp.ne.s32.totalorder %s1842_s22, %s1619_s7  ;;  %p1628_p6 = scmp.lt.s32.totalorder %s1619_s7, %s1619_s7 }
  0x22   : > { %p1622_p10 = pnand %p1620_p9, %p1608_p13  ;;  %p1629_p4 = por %p1628_p6, %p1627_p2 }
  0x24   : > { %p1623_p1 = pneg %p1622_p10 }
  0x26   : > { %p1630_p8 = pnand %p1629_p4, %p1623_p1 }
  0x28   : > { %1633 = shalt.err (!%p1630_p8)
}
  0x29   : > { %s1769_s8 = smov 64   ;;  %s1770_s9 = smov 4  }
  0x2a   : > { %1487 = dma.hbm_to_vmem [thread:$0]  (!%p1849_p11), %s2181_s1, 2048, %s1842_s22, [#allocation6], %s1769_s8, %s1769_s8, %s1770_s9  }
  0x2b   : > { %p29_p2 = scmp.eq.s32.totalorder %s28_s26, 0  ;;  %p38_p1 = scmp.ne.s32.totalorder %s1762_s14, %s1758_s13 }
  0x2c   : > { %p39_p4 = scmp.eq.s32.totalorder %s1766_s15, 0  ;;  %p1500_p6 = scmp.lt.s32.totalorder %s1766_s15, 2 }
  0x2d   : > { %s1885_s17 = scalar_select %p29_p2, %s1762_s14, %s31_s25  }
  0x2e   : > { %p40_p8 = por %p39_p4, %p38_p1  ;;  %p2191_p10 = scmp.eq.s32.totalorder %s1819_s16, 1 }
  0x2f   : > { %s154_s27 = sand.u32 1, %s1762_s14   ;;  %s1217_s28 = sshll.u32 %s1766_s15, 12 }
  0x30   : > { %p1889_p12 = por %p2191_p10, %p38_p1  ;;  %s1120_s29 = sshll.u32 %s154_s27, 8 }
  0x31   : > { %s1898_s4 = scalar_lea.hbm %s2180_s0, %s1217_s28  ;;  %s158_s22 = scalar_lea.vmem [#allocation2], %s1120_s29 }
  0x32   : > { %s166_s25 = sshll.u32 %s158_s22, 4  ;;  %p1900_p11 = pnand %p1500_p6, %p40_p8  ;;  %s1904_s25 = int_to_ptr.vmem [resolvable:$true] %s166_s25 }
  0x33   : > { %s1906_s5 = scalar_lea.sflag [#allocation3], %s154_s27  ;;  %s1634_s6 = scalar_lea.hbm %s1898_s4, 4096 }
  0x34   : > { %p1635_p13 = scmp.ne.s32.totalorder %s1898_s4, %s1634_s6  ;;  %p1636_p0 = pneg %p1900_p11 }
  0x35   : > { %s1639_s9 = scalar_lea.hbm %s2180_s0, 8192  ;;  %p1640_p7 = scmp.lt.u32.totalorder %s1898_s4, %s2180_s0 }
  0x36   : > { %p1637_p3 = pnand %p1636_p0, %p1635_p13  ;;  %p1641_p9 = scmp.lt.u32.totalorder %s1639_s9, %s1634_s6 }
  0x37   : > { %p1643_p1 = scmp.lt.u32.totalorder %s1634_s6, %s1898_s4 }
  0x38   : > { %p1638_p5 = pneg %p1637_p3  ;;  %p1642_p2 = por %p1641_p9, %p1640_p7 }
  0x3a   : > { %p1644_p4 = por %p1643_p1, %p1642_p2 }
  0x3c   : > { %p1645_p6 = pnand %p1644_p4, %p1638_p5 }
  0x3e   : > { %1648 = shalt.err (!%p1645_p6)
}
  0x3f   : > { %s1649_s27 = scalar_lea.vmem %s1904_s25, 4096  ;;  %s1771_s28 = smov [#allocation2]  }
  0x40   : > { %p1650_p8 = scmp.ne.s32.totalorder %s1904_s25, %s1649_s27  ;;  %s1654_s29 = sshll.u32 %s1771_s28, 4  ;;  %s1655_s29 = int_to_ptr.vmem [resolvable:$false] %s1654_s29 }
  0x41   : > { %s1656_s23 = scalar_lea.vmem %s1655_s29, 8192  ;;  %p1657_p3 = scmp.lt.s32.totalorder %s1904_s25, %s1655_s29 }
  0x42   : > { %p1652_p10 = pnand %p1650_p8, %p1636_p0  ;;  %p1658_p7 = scmp.lt.s32.totalorder %s1656_s23, %s1649_s27 }
  0x44   : > { %p1653_p13 = pneg %p1652_p10  ;;  %p1659_p9 = por %p1658_p7, %p1657_p3 }
  0x46   : > { %p1660_p2 = pnand %p1659_p9, %p1653_p13 }
  0x48   : > { %1663 = shalt.err (!%p1660_p2)
}
  0x49   : > { %s1772_s30 = smov 128   ;;  %s1773_s22 = smov 8  }
  0x4a   : > { %1491 = dma.hbm_to_vmem [thread:$0]  (!%p1900_p11), %s1898_s4, 4096, %s1904_s25, %s1906_s5, %s1772_s30, %s1772_s30, %s1773_s22  }
  0x4b   : > { %p2194_p0 = scmp.ne.s32.totalorder %s2189_s20, 0 }
  0x4c   : > { %s1937_s6 = sand.u32 (!%p2194_p0), 1, %s1758_s13   ;;  %p2195_p5 = scmp.ne.s32.totalorder (!%p2194_p0), %s2187_s18, 0 }
  0x4d   : > { %178 = sbr.rel (%p2194_p0) target bundleno = 468 (0x1d4), region = 28  ;;  %s1125_s7 = sshll.u32 (!%p2194_p0), %s1937_s6, 8 }
  0x4e   : > { %s181_s8 = scalar_lea.sflag (!%p2194_p0), [#allocation3], %s1937_s6  ;;  %s1941_s9 = scalar_lea.vmem (!%p2194_p0), [#allocation2], %s1125_s7 }
  0x54   : > { %1737 = dma.done.wait (%p2195_p5), %s181_s8, 4096  }
  0x55   : > { %1739 = vsyncadd (%p2195_p5), %s181_s8, 4294963200  ;;  %p2196_p11 = scmp.eq.s32.totalorder %s1819_s16, 0 }
  0x57   : > { %1741 = dma.done.wait (%p2196_p11), [#allocation6], 2048   ;;  %p2197_p1 = pmov %p2196_p11 }
  0x58   : > { %v1542_v0 = vld [vmem:[#allocation5 + $0x40] sm:$0xff]   ;;  %v1544_v2 = vld [vmem:[#allocation5 + $0x48] sm:$0xff]   ;;  %v1546_v4 = vld [vmem:[#allocation5 + $0x50] sm:$0xff]   ;;  %s1127_s18 = sshll.u32 %s1937_s6, 7  ;;  %s1250_s4 = sshll.u32 %s1819_s16, 11 }
  0x59   : > { %1743 = vsyncadd (%p2197_p1), [#allocation6], 4294965248  ;;  %v1543_v1 = vld [vmem:[#allocation5] sm:$0xff]   ;;  %1346 = vmatprep.subr.bf16.mxu0 %v1542_v0  ;;  %1458 = vmatprep.subr.bf16.mxu1 %v1542_v0  ;;  %v1545_v3 = vld [vmem:[#allocation5 + $0x8] sm:$0xff]   ;;  %s1990_s20 = scalar_lea.vmem [#allocation7], %s1127_s18  ;;  %s2051_s10 = scalar_lea.hbm %s2182_s2, %s1250_s4 }
  0x5a   : > { %1347 = vmatpush3.bf16.msra.mxu0 %v1543_v1  ;;  %1466 = vmatpush3.bf16.msra.mxu1 %v1543_v1  ;;  %v1547_v5 = vld [vmem:[#allocation5 + $0x10] sm:$0xff]   ;;  %v1548_v6 = vld [vmem:[#allocation5 + $0x58] sm:$0xff]   ;;  %v1550_v8 = vld [vmem:[#allocation5 + $0x60] sm:$0xff]   ;;  %s988_s25 = sshll.u32 %s1990_s20, 4  ;;  %s970_s11 = scalar_lea.sflag [#allocation4], %s1937_s6  ;;  %s2053_s25 = int_to_ptr.vmem [resolvable:$true] %s988_s25 }
  0x5b   : > { %1348 = vmatprep.subr.bf16.mxu0 %v1544_v2  ;;  %1459 = vmatprep.subr.bf16.mxu1 %v1544_v2  ;;  %v1549_v7 = vld [vmem:[#allocation5 + $0x18] sm:$0xff]   ;;  %v1551_v9 = vld [vmem:[#allocation5 + $0x20] sm:$0xff]   ;;  %v1552_v10 = vld [vmem:[#allocation5 + $0x68] sm:$0xff]   ;;  %s1664_s27 = scalar_lea.vmem %s2053_s25, 2048  ;;  %s1774_s28 = smov [#allocation7]  }
  0x5c   : > { %v1560_v11 = vld [vmem:[%s1941_s9 + $0x4] ss:$8 sps:$4 sm:$0xff]   ;;  %v1554_v13 = vld [vmem:[#allocation5 + $0x70] sm:$0xff]   ;;  %v1556_v16 = vld [vmem:[#allocation5 + $0x78] sm:$0xff]   ;;  %p1665_p4 = scmp.ne.s32.totalorder %s2053_s25, %s1664_s27  ;;  %s1668_s29 = sshll.u32 %s1774_s28, 4  ;;  %s1669_s29 = int_to_ptr.vmem [resolvable:$false] %s1668_s29 }
  0x5d   : > { %v1553_v12 = vld [vmem:[#allocation5 + $0x28] sm:$0xff]   ;;  %571 = vmatprep.mubr.bf16.mxu0 %v1560_v11  ;;  %v1555_v15 = vld [vmem:[#allocation5 + $0x30] sm:$0xff]   ;;  %v1557_v17 = vld [vmem:[#allocation5 + $0x38] sm:$0xff]   ;;  %s1670_s23 = scalar_lea.vmem %s1669_s29, 4096  ;;  %p1671_p10 = scmp.lt.s32.totalorder %s2053_s25, %s1669_s29 }
  0x5e   : > { %1349 = vmatpush3.bf16.msra.mxu0 %v1545_v3  ;;  %1467 = vmatpush3.bf16.msra.mxu1 %v1545_v3  ;;  %v1572_v14 = vld [vmem:[%s1941_s9 + $0x84] ss:$8 sps:$4 sm:$0xff]   ;;  %v1558_v18 = vld [vmem:[%s1941_s9] ss:$8 sps:$4 sm:$0xff]   ;;  %v1561_v19 = vld [vmem:[%s1941_s9 + $0x14] ss:$8 sps:$4 sm:$0xff]   ;;  %p1666_p6 = pnand %p1665_p4, %p1889_p12  ;;  %p1672_p13 = scmp.lt.s32.totalorder %s1670_s23, %s1664_s27 }
  0x5f   : > { %1350 = vmatprep.subr.bf16.mxu0 %v1546_v4  ;;  %1460 = vmatprep.subr.bf16.mxu1 %v1546_v4  ;;  %v1570_v20 = vld [vmem:[%s1941_s9 + $0x80] ss:$8 sps:$4 sm:$0xff]   ;;  %v1576_v21 = vld [vmem:[%s1941_s9 + $0x94] ss:$8 sps:$4 sm:$0xff]   ;;  %v1563_v22 = vld [vmem:[%s1941_s9 + $0x10] ss:$8 sps:$4 sm:$0xff]  }
  0x60   : > { %635 = vmatprep.mubr.bf16.mxu1 %v1572_v14  ;;  %v1564_v23 = vld [vmem:[%s1941_s9 + $0x24] ss:$8 sps:$4 sm:$0xff]   ;;  %v1578_v24 = vld [vmem:[%s1941_s9 + $0x90] ss:$8 sps:$4 sm:$0xff]   ;;  %v1566_v26 = vld [vmem:[%s1941_s9 + $0x20] ss:$8 sps:$4 sm:$0xff]   ;;  %p1667_p8 = pneg %p1666_p6  ;;  %p1673_p3 = por %p1672_p13, %p1671_p10 }
  0x61   : > { %v1582_v25 = vld [vmem:[%s1941_s9 + $0xa4] ss:$8 sps:$4 sm:$0xff]   ;;  %v1567_v27 = vld [vmem:[%s1941_s9 + $0x34] ss:$8 sps:$4 sm:$0xff]   ;;  %v1584_v28 = vld [vmem:[%s1941_s9 + $0xa0] ss:$8 sps:$4 sm:$0xff]  }
  0x62   : > { %1351 = vmatpush3.bf16.msra.mxu0 %v1547_v5  ;;  %1468 = vmatpush3.bf16.msra.mxu1 %v1547_v5  ;;  %v1588_v29 = vld [vmem:[%s1941_s9 + $0xb4] ss:$8 sps:$4 sm:$0xff]   ;;  %v1569_v30 = vld [vmem:[%s1941_s9 + $0x30] ss:$8 sps:$4 sm:$0xff]   ;;  %v1573_v31 = vld [vmem:[%s1941_s9 + $0x44] ss:$8 sps:$4 sm:$0xff]   ;;  %p1674_p7 = pnand %p1673_p3, %p1667_p8 }
  0x63   : > { %1352 = vmatprep.subr.bf16.mxu0 %v1548_v6  ;;  %1461 = vmatprep.subr.bf16.mxu1 %v1548_v6  ;;  %v1590_v32 = vld [vmem:[%s1941_s9 + $0xb0] ss:$8 sps:$4 sm:$0xff]   ;;  %v1594_v33 = vld [vmem:[%s1941_s9 + $0xc4] ss:$8 sps:$4 sm:$0xff]   ;;  %v1575_v34 = vld [vmem:[%s1941_s9 + $0x40] ss:$8 sps:$4 sm:$0xff]  }
  0x64   : > { %v1579_v35 = vld [vmem:[%s1941_s9 + $0x54] ss:$8 sps:$4 sm:$0xff]   ;;  %v1596_v36 = vld [vmem:[%s1941_s9 + $0xc0] ss:$8 sps:$4 sm:$0xff]   ;;  %v1581_v38 = vld [vmem:[%s1941_s9 + $0x50] ss:$8 sps:$4 sm:$0xff]  }
  0x65   : > { %v1597_v37 = vld [vmem:[%s1941_s9 + $0xd4] ss:$8 sps:$4 sm:$0xff]   ;;  %v1585_v39 = vld [vmem:[%s1941_s9 + $0x64] ss:$8 sps:$4 sm:$0xff]   ;;  %v1599_v40 = vld [vmem:[%s1941_s9 + $0xd0] ss:$8 sps:$4 sm:$0xff]  }
  0x66   : > { %1353 = vmatpush3.bf16.msra.mxu0 %v1549_v7  ;;  %1469 = vmatpush3.bf16.msra.mxu1 %v1549_v7  ;;  %v1600_v41 = vld [vmem:[%s1941_s9 + $0xe4] ss:$8 sps:$4 sm:$0xff]   ;;  %v1587_v42 = vld [vmem:[%s1941_s9 + $0x60] ss:$8 sps:$4 sm:$0xff]   ;;  %v1591_v43 = vld [vmem:[%s1941_s9 + $0x74] ss:$8 sps:$4 sm:$0xff]  }
  0x67   : > { %1354 = vmatprep.subr.bf16.mxu0 %v1550_v8  ;;  %1462 = vmatprep.subr.bf16.mxu1 %v1550_v8  ;;  %v1602_v44 = vld [vmem:[%s1941_s9 + $0xe0] ss:$8 sps:$4 sm:$0xff]   ;;  %v1603_v45 = vld [vmem:[%s1941_s9 + $0xf4] ss:$8 sps:$4 sm:$0xff]   ;;  %v1593_v46 = vld [vmem:[%s1941_s9 + $0x70] ss:$8 sps:$4 sm:$0xff]  }
  0x68   : > { %v1605_v47 = vld [vmem:[%s1941_s9 + $0xf0] ss:$8 sps:$4 sm:$0xff]  }
  0x6a   : > { %1355 = vmatpush3.bf16.msra.mxu0 %v1551_v9  ;;  %1470 = vmatpush3.bf16.msra.mxu1 %v1551_v9 }
  0x6b   : > { %1356 = vmatprep.subr.bf16.mxu0 %v1552_v10  ;;  %1463 = vmatprep.subr.bf16.mxu1 %v1552_v10 }
  0x6e   : > { %1357 = vmatpush3.bf16.msra.mxu0 %v1553_v12  ;;  %1471 = vmatpush3.bf16.msra.mxu1 %v1553_v12 }
  0x6f   : > { %1358 = vmatprep.subr.bf16.mxu0 %v1554_v13  ;;  %1464 = vmatprep.subr.bf16.mxu1 %v1554_v13 }
  0x72   : > { %1359 = vmatpush3.bf16.msra.mxu0 %v1555_v15  ;;  %1472 = vmatpush3.bf16.msra.mxu1 %v1555_v15 }
  0x73   : > { %1360 = vmatprep.subr.bf16.mxu0 %v1556_v16  ;;  %1465 = vmatprep.subr.bf16.mxu1 %v1556_v16 }
  0x76   : > { %1361 = vmatpush3.bf16.msra.mxu0 %v1557_v17  ;;  %1473 = vmatpush3.bf16.msra.mxu1 %v1557_v17 }
  0x79   : > { %572 = vmatmul.mubr.bf16.vlgmr.msra.gmra.mrb[0].mxu0 %v1558_v18  ;;  %636 = vmatmul.mubr.bf16.vlgmr.msra.gmra.mrb[0].mxu1 %v1570_v20 }
  0x7a   : > { %579 = vmatprep.mubr.bf16.mxu0 %v1561_v19  ;;  %643 = vmatprep.mubr.bf16.mxu1 %v1576_v21 }
  0x81   : > { %580 = vmatmul.mubr.bf16.gmra.mrb[4].mxu0 %v1563_v22  ;;  %644 = vmatmul.mubr.bf16.gmra.mrb[4].mxu1 %v1578_v24 }
  0x82   : > { %587 = vmatprep.mubr.bf16.mxu0 %v1564_v23  ;;  %651 = vmatprep.mubr.bf16.mxu1 %v1582_v25 }
  0x89   : > { %588 = vmatmul.mubr.bf16.gmra.mrb[8].mxu0 %v1566_v26  ;;  %652 = vmatmul.mubr.bf16.gmra.mrb[8].mxu1 %v1584_v28 }
  0x8a   : > { %595 = vmatprep.mubr.bf16.mxu0 %v1567_v27  ;;  %659 = vmatprep.mubr.bf16.mxu1 %v1588_v29 }
  0x91   : > { %596 = vmatmul.mubr.bf16.gmra.mrb[12].mxu0 %v1569_v30  ;;  %660 = vmatmul.mubr.bf16.gmra.mrb[12].mxu1 %v1590_v32 }
  0x92   : > { %603 = vmatprep.mubr.bf16.mxu0 %v1573_v31  ;;  %667 = vmatprep.mubr.bf16.mxu1 %v1594_v33 }
  0x99   : > { %604 = vmatmul.mubr.bf16.gmra.mrb[16].mxu0 %v1575_v34  ;;  %668 = vmatmul.mubr.bf16.gmra.mrb[16].mxu1 %v1596_v36 }
  0x9a   : > { %611 = vmatprep.mubr.bf16.mxu0 %v1579_v35  ;;  %675 = vmatprep.mubr.bf16.mxu1 %v1597_v37 }
  0xa1   : > { %612 = vmatmul.mubr.bf16.gmra.mrb[20].mxu0 %v1581_v38  ;;  %676 = vmatmul.mubr.bf16.gmra.mrb[20].mxu1 %v1599_v40 }
  0xa2   : > { %619 = vmatprep.mubr.bf16.mxu0 %v1585_v39  ;;  %683 = vmatprep.mubr.bf16.mxu1 %v1600_v41 }
  0xa9   : > { %620 = vmatmul.mubr.bf16.gmra.mrb[24].mxu0 %v1587_v42  ;;  %684 = vmatmul.mubr.bf16.gmra.mrb[24].mxu1 %v1602_v44 }
  0xaa   : > { %627 = vmatprep.mubr.bf16.mxu0 %v1591_v43  ;;  %691 = vmatprep.mubr.bf16.mxu1 %v1603_v45 }
  0xb1   : > { %628 = vmatmul.mubr.bf16.gmra.mrb[28].mxu0 %v1593_v46  ;;  %692 = vmatmul.mubr.bf16.gmra.mrb[28].mxu1 %v1605_v47 }
 0x14c   : > { %v1362_v48 = vpop.f32.mrb[0].mxu0  ;;  %v1410_v50 = vpop.f32.mrb[0].mxu1 }
 0x14d   : > { %v1363_v49 = vpop.f32.mrb[1].mxu0  ;;  %v1411_v53 = vpop.f32.mrb[1].mxu1 }
 0x14e   : > { %v1364_v51 = vadd.f32 %v1363_v49, %v1362_v48  ;;  %v1365_v52 = vpop.f32.mrb[2].mxu0  ;;  %v1984_v55 = vadd.f32 %v1411_v53, %v1410_v50  ;;  %v1413_v56 = vpop.f32.mrb[2].mxu1 }
 0x14f   : > { %v1366_v54 = vpop.f32.mrb[3].mxu0  ;;  %v1414_v58 = vpop.f32.mrb[3].mxu1 }
 0x150   : > { %v1367_v57 = vadd.f32 %v1366_v54, %v1365_v52  ;;  %v1986_v59 = vadd.f32 %v1414_v58, %v1413_v56  ;;  %v897_v60 = vmul.f32 %v1364_v51, %v1364_v51 }
 0x152   : > { %v1254_v61 = vpack.c.bf16 %v1367_v57, %v1364_v51  ;;  %v860_v62 = vadd.f32 %v1367_v57, %v1364_v51  ;;  %v898_v63 = vmul.f32 %v1367_v57, %v1367_v57  ;;  %v1294_v0 = vpack.c.bf16 %v1986_v59, %v1984_v55 }
 0x154   : > { %1255 = vst [vmem:[%s1990_s20] sm:$0xff] %v1254_v61   ;;  %v929_v1 = vadd.f32 %v898_v63, %v897_v60  ;;  %v1368_v2 = vpop.f32.mrb[4].mxu0  ;;  %1338 = vst [vmem:[%s1990_s20 + $0x40] sm:$0xff] %v1294_v0   ;;  %v1416_v4 = vpop.f32.mrb[4].mxu1 }
 0x155   : > { %v1369_v3 = vpop.f32.mrb[5].mxu0  ;;  %v1417_v7 = vpop.f32.mrb[5].mxu1 }
 0x156   : > { %v1370_v5 = vadd.f32 %v1369_v3, %v1368_v2  ;;  %v1371_v6 = vpop.f32.mrb[6].mxu0  ;;  %v1994_v9 = vadd.f32 %v1417_v7, %v1416_v4  ;;  %v1419_v10 = vpop.f32.mrb[6].mxu1 }
 0x157   : > { %v1372_v8 = vpop.f32.mrb[7].mxu0  ;;  %v1420_v14 = vpop.f32.mrb[7].mxu1 }
 0x158   : > { %v861_v11 = vadd.f32 %v1370_v5, %v860_v62  ;;  %v899_v12 = vmul.f32 %v1370_v5, %v1370_v5  ;;  %v1373_v13 = vadd.f32 %v1372_v8, %v1371_v6  ;;  %v1996_v15 = vadd.f32 %v1420_v14, %v1419_v10 }
 0x15a   : > { %v930_v16 = vadd.f32 %v929_v1, %v899_v12  ;;  %v1259_v17 = vpack.c.bf16 %v1373_v13, %v1370_v5  ;;  %v862_v18 = vadd.f32 %v1373_v13, %v861_v11  ;;  %v900_v19 = vmul.f32 %v1373_v13, %v1373_v13 }
 0x15b   : > { %v1299_v20 = vpack.c.bf16 %v1996_v15, %v1994_v9 }
 0x15c   : > { %1331 = vst [vmem:[%s1990_s20 + $0x8] sm:$0xff] %v1259_v17   ;;  %v931_v21 = vadd.f32 %v930_v16, %v900_v19  ;;  %v1374_v22 = vpop.f32.mrb[8].mxu0  ;;  %v1422_v24 = vpop.f32.mrb[8].mxu1 }
 0x15d   : > { %v1375_v23 = vpop.f32.mrb[9].mxu0  ;;  %1339 = vst [vmem:[%s1990_s20 + $0x48] sm:$0xff] %v1299_v20   ;;  %v1423_v27 = vpop.f32.mrb[9].mxu1 }
 0x15e   : > { %v1376_v25 = vadd.f32 %v1375_v23, %v1374_v22  ;;  %v1377_v26 = vpop.f32.mrb[10].mxu0  ;;  %v2002_v29 = vadd.f32 %v1423_v27, %v1422_v24  ;;  %v1425_v30 = vpop.f32.mrb[10].mxu1 }
 0x15f   : > { %v1378_v28 = vpop.f32.mrb[11].mxu0  ;;  %v1426_v34 = vpop.f32.mrb[11].mxu1 }
 0x160   : > { %v863_v31 = vadd.f32 %v1376_v25, %v862_v18  ;;  %v901_v32 = vmul.f32 %v1376_v25, %v1376_v25  ;;  %v1379_v33 = vadd.f32 %v1378_v28, %v1377_v26  ;;  %v2004_v35 = vadd.f32 %v1426_v34, %v1425_v30 }
 0x162   : > { %v932_v36 = vadd.f32 %v931_v21, %v901_v32  ;;  %v1264_v37 = vpack.c.bf16 %v1379_v33, %v1376_v25  ;;  %v864_v38 = vadd.f32 %v1379_v33, %v863_v31  ;;  %v902_v39 = vmul.f32 %v1379_v33, %v1379_v33 }
 0x163   : > { %v1304_v40 = vpack.c.bf16 %v2004_v35, %v2002_v29 }
 0x164   : > { %1332 = vst [vmem:[%s1990_s20 + $0x10] sm:$0xff] %v1264_v37   ;;  %v933_v41 = vadd.f32 %v932_v36, %v902_v39  ;;  %v1380_v42 = vpop.f32.mrb[12].mxu0  ;;  %v1428_v44 = vpop.f32.mrb[12].mxu1 }
 0x165   : > { %v1381_v43 = vpop.f32.mrb[13].mxu0  ;;  %1340 = vst [vmem:[%s1990_s20 + $0x50] sm:$0xff] %v1304_v40   ;;  %v1429_v47 = vpop.f32.mrb[13].mxu1 }
 0x166   : > { %v1382_v45 = vadd.f32 %v1381_v43, %v1380_v42  ;;  %v1383_v46 = vpop.f32.mrb[14].mxu0  ;;  %v2010_v49 = vadd.f32 %v1429_v47, %v1428_v44  ;;  %v1431_v50 = vpop.f32.mrb[14].mxu1 }
 0x167   : > { %v1384_v48 = vpop.f32.mrb[15].mxu0  ;;  %v1432_v54 = vpop.f32.mrb[15].mxu1 }
 0x168   : > { %v865_v51 = vadd.f32 %v1382_v45, %v864_v38  ;;  %v903_v52 = vmul.f32 %v1382_v45, %v1382_v45  ;;  %v1385_v53 = vadd.f32 %v1384_v48, %v1383_v46  ;;  %v2012_v56 = vadd.f32 %v1432_v54, %v1431_v50 }
 0x16a   : > { %v934_v57 = vadd.f32 %v933_v41, %v903_v52  ;;  %v1269_v58 = vpack.c.bf16 %v1385_v53, %v1382_v45  ;;  %v866_v60 = vadd.f32 %v1385_v53, %v865_v51  ;;  %v904_v61 = vmul.f32 %v1385_v53, %v1385_v53 }
 0x16b   : > { %v1309_v62 = vpack.c.bf16 %v2012_v56, %v2010_v49 }
 0x16c   : > { %1333 = vst [vmem:[%s1990_s20 + $0x18] sm:$0xff] %v1269_v58   ;;  %v935_v63 = vadd.f32 %v934_v57, %v904_v61  ;;  %v1386_v0 = vpop.f32.mrb[16].mxu0  ;;  %v1434_v2 = vpop.f32.mrb[16].mxu1 }
 0x16d   : > { %v1387_v1 = vpop.f32.mrb[17].mxu0  ;;  %1341 = vst [vmem:[%s1990_s20 + $0x58] sm:$0xff] %v1309_v62   ;;  %v1435_v5 = vpop.f32.mrb[17].mxu1 }
 0x16e   : > { %v1388_v3 = vadd.f32 %v1387_v1, %v1386_v0  ;;  %v1389_v4 = vpop.f32.mrb[18].mxu0  ;;  %v2018_v7 = vadd.f32 %v1435_v5, %v1434_v2  ;;  %v1437_v8 = vpop.f32.mrb[18].mxu1 }
 0x16f   : > { %v1390_v6 = vpop.f32.mrb[19].mxu0  ;;  %v1438_v13 = vpop.f32.mrb[19].mxu1 }
 0x170   : > { %v867_v10 = vadd.f32 %v1388_v3, %v866_v60  ;;  %v905_v11 = vmul.f32 %v1388_v3, %v1388_v3  ;;  %v1391_v12 = vadd.f32 %v1390_v6, %v1389_v4  ;;  %v2020_v14 = vadd.f32 %v1438_v13, %v1437_v8 }
 0x172   : > { %v936_v16 = vadd.f32 %v935_v63, %v905_v11  ;;  %v1274_v17 = vpack.c.bf16 %v1391_v12, %v1388_v3  ;;  %v868_v18 = vadd.f32 %v1391_v12, %v867_v10  ;;  %v906_v19 = vmul.f32 %v1391_v12, %v1391_v12 }
 0x173   : > { %v1314_v20 = vpack.c.bf16 %v2020_v14, %v2018_v7 }
 0x174   : > { %1334 = vst [vmem:[%s1990_s20 + $0x20] sm:$0xff] %v1274_v17   ;;  %v937_v21 = vadd.f32 %v936_v16, %v906_v19  ;;  %v1392_v22 = vpop.f32.mrb[20].mxu0  ;;  %v1440_v24 = vpop.f32.mrb[20].mxu1 }
 0x175   : > { %v1393_v23 = vpop.f32.mrb[21].mxu0  ;;  %1342 = vst [vmem:[%s1990_s20 + $0x60] sm:$0xff] %v1314_v20   ;;  %v1441_v27 = vpop.f32.mrb[21].mxu1 }
 0x176   : > { %v1394_v25 = vadd.f32 %v1393_v23, %v1392_v22  ;;  %v1395_v26 = vpop.f32.mrb[22].mxu0  ;;  %v2026_v30 = vadd.f32 %v1441_v27, %v1440_v24  ;;  %v1443_v31 = vpop.f32.mrb[22].mxu1  ;;  %v913_v27 = vmul.f32 %v1984_v55, %v1984_v55 }
 0x177   : > { %v1396_v28 = vpop.f32.mrb[23].mxu0  ;;  %v1444_v36 = vpop.f32.mrb[23].mxu1 }
 0x178   : > { %v869_v32 = vadd.f32 %v1394_v25, %v868_v18  ;;  %v907_v33 = vmul.f32 %v1394_v25, %v1394_v25  ;;  %v1397_v34 = vadd.f32 %v1396_v28, %v1395_v26  ;;  %v2028_v37 = vadd.f32 %v1444_v36, %v1443_v31 }
 0x17a   : > { %v938_v38 = vadd.f32 %v937_v21, %v907_v33  ;;  %v1279_v39 = vpack.c.bf16 %v1397_v34, %v1394_v25  ;;  %v870_v40 = vadd.f32 %v1397_v34, %v869_v32  ;;  %v908_v41 = vmul.f32 %v1397_v34, %v1397_v34 }
 0x17b   : > { %v1319_v42 = vpack.c.bf16 %v2028_v37, %v2026_v30  ;;  %v914_v32 = vmul.f32 %v1986_v59, %v1986_v59 }
 0x17c   : > { %1335 = vst [vmem:[%s1990_s20 + $0x28] sm:$0xff] %v1279_v39   ;;  %v939_v43 = vadd.f32 %v938_v38, %v908_v41  ;;  %v1398_v44 = vpop.f32.mrb[24].mxu0  ;;  %v1446_v46 = vpop.f32.mrb[24].mxu1 }
 0x17d   : > { %v1399_v45 = vpop.f32.mrb[25].mxu0  ;;  %1343 = vst [vmem:[%s1990_s20 + $0x68] sm:$0xff] %v1319_v42   ;;  %v1447_v50 = vpop.f32.mrb[25].mxu1 }
 0x17e   : > { %v1400_v47 = vadd.f32 %v1399_v45, %v1398_v44  ;;  %v1401_v48 = vpop.f32.mrb[26].mxu0  ;;  %v2034_v52 = vadd.f32 %v1447_v50, %v1446_v46  ;;  %v1449_v53 = vpop.f32.mrb[26].mxu1 }
 0x17f   : > { %v1402_v51 = vpop.f32.mrb[27].mxu0  ;;  %v1450_v60 = vpop.f32.mrb[27].mxu1 }
 0x180   : > { %v871_v54 = vadd.f32 %v1400_v47, %v870_v40  ;;  %v909_v57 = vmul.f32 %v1400_v47, %v1400_v47  ;;  %v1403_v58 = vadd.f32 %v1402_v51, %v1401_v48  ;;  %v2036_v61 = vadd.f32 %v1450_v60, %v1449_v53 }
 0x182   : > { %v940_v62 = vadd.f32 %v939_v43, %v909_v57  ;;  %v1284_v63 = vpack.c.bf16 %v1403_v58, %v1400_v47  ;;  %v872_v0 = vadd.f32 %v1403_v58, %v871_v54  ;;  %v910_v1 = vmul.f32 %v1403_v58, %v1403_v58 }
 0x183   : > { %v1324_v2 = vpack.c.bf16 %v2036_v61, %v2034_v52 }
 0x184   : > { %1336 = vst [vmem:[%s1990_s20 + $0x30] sm:$0xff] %v1284_v63   ;;  %v941_v3 = vadd.f32 %v940_v62, %v910_v1  ;;  %v1404_v4 = vpop.f32.mrb[28].mxu0  ;;  %v1452_v6 = vpop.f32.mrb[28].mxu1 }
 0x185   : > { %v1405_v5 = vpop.f32.mrb[29].mxu0  ;;  %1344 = vst [vmem:[%s1990_s20 + $0x70] sm:$0xff] %v1324_v2   ;;  %v1453_v11 = vpop.f32.mrb[29].mxu1 }
 0x186   : > { %v1406_v8 = vadd.f32 %v1405_v5, %v1404_v4  ;;  %v1407_v10 = vpop.f32.mrb[30].mxu0  ;;  %v2042_v13 = vadd.f32 %v1453_v11, %v1452_v6  ;;  %v1455_v16 = vpop.f32.mrb[30].mxu1 }
 0x187   : > { %v1408_v12 = vpop.f32.mrb[31].mxu0  ;;  %v1456_v20 = vpop.f32.mrb[31].mxu1 }
 0x188   : > { %v873_v17 = vadd.f32 %v1406_v8, %v872_v0  ;;  %v911_v18 = vmul.f32 %v1406_v8, %v1406_v8  ;;  %v1409_v19 = vadd.f32 %v1408_v12, %v1407_v10  ;;  %v2046_v21 = vadd.f32 %v1456_v20, %v1455_v16 }
 0x18a   : > { %v942_v22 = vadd.f32 %v941_v3, %v911_v18  ;;  %v1289_v23 = vpack.c.bf16 %v1409_v19, %v1406_v8  ;;  %v874_v24 = vadd.f32 %v1409_v19, %v873_v17  ;;  %v912_v25 = vmul.f32 %v1409_v19, %v1409_v19 }
 0x18b   : > { %v1329_v26 = vpack.c.bf16 %v2046_v21, %v2042_v13 }
 0x18c   : > { %1337 = vst [vmem:[%s1990_s20 + $0x38] sm:$0xff] %v1289_v23   ;;  %v875_v28 = vadd.f32 %v1984_v55, %v874_v24  ;;  %v943_v31 = vadd.f32 %v942_v22, %v912_v25 }
 0x18d   : > { %1345 = vst [vmem:[%s1990_s20 + $0x78] sm:$0xff] %v1329_v26  }
 0x18e   : > { %v876_v33 = vadd.f32 %v1986_v59, %v875_v28  ;;  %v944_v34 = vadd.f32 %v943_v31, %v913_v27 }
 0x18f   : > { %1677 = shalt.err (!%p1674_p7)
}
 0x190   : > { %s1678_s30 = scalar_lea.hbm %s2051_s10, 2048  ;;  %s1682_s8 = scalar_lea.hbm %s2182_s2, 4096 }
 0x191   : > { %p1679_p9 = scmp.ne.s32.totalorder %s2051_s10, %s1678_s30  ;;  %p1683_p5 = scmp.lt.u32.totalorder %s2051_s10, %s2182_s2 }
 0x192   : > { %p1684_p11 = scmp.lt.u32.totalorder %s1682_s8, %s1678_s30  ;;  %p1686_p4 = scmp.lt.u32.totalorder %s1678_s30, %s2051_s10 }
 0x193   : > { %p1680_p2 = pnand %p1679_p9, %p1889_p12 }
 0x194   : > { %p1685_p1 = por %p1684_p11, %p1683_p5 }
 0x195   : > { %p1681_p0 = pneg %p1680_p2 }
 0x196   : > { %p1687_p6 = por %p1686_p4, %p1685_p1 }
 0x198   : > { %p1688_p8 = pnand %p1687_p6, %p1681_p0 }
 0x19a   : > { %1691 = shalt.err (!%p1688_p8)
}
 0x19b   : > { %s1775_s20 = smov 64   ;;  %s1776_s4 = smov 4   ;;  %v915_v55 = vmul.f32 %v1994_v9, %v1994_v9  ;;  %v877_v59 = vadd.f32 %v1994_v9, %v876_v33  ;;  %v945_v36 = vadd.f32 %v944_v34, %v914_v32  ;;  %v916_v38 = vmul.f32 %v1996_v15, %v1996_v15 }
 0x19c   : > { %1480 = dma.vmem_to_hbm [thread:$0]  (%p1889_p12), %s2053_s25, 2048, %s2051_s10, %s970_s11, %s1775_s20, %s1775_s20, %s1776_s4   ;;  %v917_v41 = vmul.f32 %v2002_v29, %v2002_v29  ;;  %v918_v44 = vmul.f32 %v2004_v35, %v2004_v35  ;;  %v919_v9 = vmul.f32 %v2010_v49, %v2010_v49  ;;  %v921_v53 = vmul.f32 %v2018_v7, %v2018_v7 }
 0x19d   : > { %v878_v39 = vadd.f32 %v1996_v15, %v877_v59  ;;  %v946_v40 = vadd.f32 %v945_v36, %v915_v55  ;;  %v920_v15 = vmul.f32 %v2012_v56, %v2012_v56  ;;  %v922_v58 = vmul.f32 %v2020_v14, %v2020_v14  ;;  %s1128_s25 = sshll.u32 %s1937_s6, 1  ;;  %s1213_s26 = sshll.u32 %s1819_s16, 5 }
 0x19e   : > { %v923_v62 = vmul.f32 %v2026_v30, %v2026_v30  ;;  %v924_v0 = vmul.f32 %v2028_v37, %v2028_v37  ;;  %v925_v2 = vmul.f32 %v2034_v52, %v2034_v52  ;;  %v926_v4 = vmul.f32 %v2036_v61, %v2036_v61  ;;  %s215_s5 = scalar_lea.vmem [#allocation8], %s1128_s25  ;;  %s2136_s28 = scalar_lea.hbm %s2183_s3, %s1213_s26 }
 0x19f   : > { %v947_v42 = vadd.f32 %v946_v40, %v916_v38  ;;  %v879_v43 = vadd.f32 %v2002_v29, %v878_v39  ;;  %s1004_s10 = sshll.u32 %s215_s5, 4  ;;  %vm966_vm0 = vcmask 1040384   ;;  %s975_s29 = scalar_lea.sflag [#allocation9], %s1937_s6  ;;  %s2138_s10 = int_to_ptr.vmem [resolvable:$true] %s1004_s10 }
 0x1a0   : > { %s1692_s23 = scalar_lea.vmem %s2138_s10, 32  ;;  %s1777_s16 = smov [#allocation8]  }
 0x1a1   : > { %v880_v45 = vadd.f32 %v2004_v35, %v879_v43  ;;  %v948_v46 = vadd.f32 %v947_v42, %v917_v41  ;;  %p1693_p10 = scmp.ne.s32.totalorder %s2138_s10, %s1692_s23  ;;  %s1696_s30 = sshll.u32 %s1777_s16, 4  ;;  %s1697_s30 = int_to_ptr.vmem [resolvable:$false] %s1696_s30 }
 0x1a2   : > { %s1698_s22 = scalar_lea.vmem %s1697_s30, 64  ;;  %p1699_p7 = scmp.lt.s32.totalorder %s2138_s10, %s1697_s30 }
 0x1a3   : > { %v881_v47 = vadd.f32 %v2010_v49, %v880_v45  ;;  %v949_v48 = vadd.f32 %v948_v46, %v918_v44  ;;  %p1694_p13 = pnand %p1693_p10, %p1889_p12  ;;  %p1700_p9 = scmp.lt.s32.totalorder %s1698_s22, %s1692_s23 }
 0x1a5   : > { %v882_v50 = vadd.f32 %v2012_v56, %v881_v47  ;;  %v950_v51 = vadd.f32 %v949_v48, %v919_v9  ;;  %p1695_p3 = pneg %p1694_p13  ;;  %p1701_p2 = por %p1700_p9, %p1699_p7 }
 0x1a7   : > { %v883_v29 = vadd.f32 %v2018_v7, %v882_v50  ;;  %v951_v54 = vadd.f32 %v950_v51, %v920_v15  ;;  %p1702_p0 = pnand %p1701_p2, %p1695_p3 }
 0x1a9   : > { %v952_v35 = vadd.f32 %v951_v54, %v921_v53  ;;  %v884_v57 = vadd.f32 %v2020_v14, %v883_v29 }
 0x1ab   : > { %v953_v49 = vadd.f32 %v952_v35, %v922_v58  ;;  %v885_v60 = vadd.f32 %v2026_v30, %v884_v57  ;;  %v927_v30 = vmul.f32 %v2042_v13, %v2042_v13 }
 0x1ad   : > { %v954_v56 = vadd.f32 %v953_v49, %v923_v62  ;;  %v886_v63 = vadd.f32 %v2028_v37, %v885_v60 }
 0x1af   : > { %v955_v7 = vadd.f32 %v954_v56, %v924_v0  ;;  %v887_v1 = vadd.f32 %v2034_v52, %v886_v63  ;;  %v928_v52 = vmul.f32 %v2046_v21, %v2046_v21 }
 0x1b1   : > { %v956_v14 = vadd.f32 %v955_v7, %v925_v2  ;;  %v888_v3 = vadd.f32 %v2036_v61, %v887_v1 }
 0x1b3   : > { %v957_v5 = vadd.f32 %v956_v14, %v926_v4  ;;  %v889_v6 = vadd.f32 %v2042_v13, %v888_v3 }
 0x1b5   : > { %v958_v37 = vadd.f32 %v957_v5, %v927_v30  ;;  %v890_v8 = vadd.f32 %v2046_v21, %v889_v6 }
 0x1b7   : > { %v891_v10 = vrot.slane %v890_v8, 4  ;;  %v959_v11 = vadd.f32 %v958_v37, %v928_v52 }
 0x1b9   : > { %v892_v12 = vadd.f32 %v891_v10, %v890_v8  ;;  %v960_v16 = vrot.slane %v959_v11, 4 }
 0x1bb   : > { %v893_v17 = vrot.slane %v892_v12, 2  ;;  %v961_v18 = vadd.f32 %v960_v16, %v959_v11 }
 0x1bd   : > { %v894_v61 = vadd.f32 %v893_v17, %v892_v12  ;;  %v962_v19 = vrot.slane %v961_v18, 2 }
 0x1bf   : > { %v895_v20 = vrot.slane %v894_v61, 1  ;;  %v963_v13 = vadd.f32 %v962_v19, %v961_v18 }
 0x1c1   : > { %v964_v22 = vrot.slane %v963_v13, 1  ;;  %v896_v23 = vadd.f32 %v895_v20, %v894_v61 }
 0x1c3   : > { %v965_v21 = vadd.f32 %v964_v22, %v963_v13 }
 0x1c5   : > { %v967_v24 = vsel %vm966_vm0, %v896_v23, %v965_v21 }
 0x1c6   : > { %968 = vst [vmem:[%s215_s5] sm:$0x3] %v967_v24 }
 0x1c7   : > { %1705 = shalt.err (!%p1702_p0)
}
 0x1c8   : > { %s1706_s6 = scalar_lea.hbm %s2136_s28, 32  ;;  %s1710_s9 = scalar_lea.hbm %s2183_s3, 64 }
 0x1c9   : > { %p1707_p5 = scmp.ne.s32.totalorder %s2136_s28, %s1706_s6  ;;  %p1711_p4 = scmp.lt.u32.totalorder %s2136_s28, %s2183_s3 }
 0x1ca   : > { %p1712_p6 = scmp.lt.u32.totalorder %s1710_s9, %s1706_s6  ;;  %p1714_p10 = scmp.lt.u32.totalorder %s1706_s6, %s2136_s28 }
 0x1cb   : > { %p1708_p11 = pnand %p1707_p5, %p1889_p12 }
 0x1cc   : > { %p1713_p8 = por %p1712_p6, %p1711_p4 }
 0x1cd   : > { %p1709_p1 = pneg %p1708_p11 }
 0x1ce   : > { %p1715_p13 = por %p1714_p10, %p1713_p8 }
 0x1d0   : > { %p1716_p3 = pnand %p1715_p13, %p1709_p1 }
 0x1d2   : > { %1719 = shalt.err (!%p1716_p3)
}
 0x1d3   : > { %1481 = dma.vmem_to_hbm [thread:$0]  (%p1889_p12), %s2138_s10, 32, %s2136_s28, %s975_s29  }
 0x1d4 PF: > { %s1016_s4 = sand.u32 1, %s1754_s12   ;;  %p2198_p7 = scmp.ne.s32.totalorder %s2188_s19, 0 }
 0x1d5   : > { %p2199_p9 = scmp.ge.s32.totalorder %s1766_s15, 2  ;;  %s1017_s25 = scalar_lea.sflag [#allocation4], %s1016_s4 }
 0x1d7   : > { %p1493_p2 = pnand %p2199_p9, %p2198_p7 }
 0x1d9   : > { %1745 = dma.done.wait (!%p1493_p2), %s1017_s25, 2048  }
 0x1da   : > { %1747 = vsyncadd (!%p1493_p2), %s1017_s25, 4294965248  ;;  %s1026_s26 = scalar_lea.sflag [#allocation9], %s1016_s4 }
 0x1db   : > { %1749 = dma.done.wait (!%p1493_p2), %s1026_s26, 32  }
 0x1dc   : > { %1751 = vsyncadd (!%p1493_p2), %s1026_s26, 4294967264  ;;  %p21_p12 = scmp.ge.s32.totalorder %s1854_s24, 4   ;;  %s2200_s12 = smov %s1758_s13 }
 0x1dd   : > { %s2201_s13 = smov %s1762_s14  ;;  %s2202_s14 = smov %s1885_s17 }
 0x1de   : > { %s2203_s15 = smov %s1854_s24  ;;  %23 = sbr.rel (!%p21_p12) target bundleno = 8 (0x8), region = 94 }
 0x1e5   :  { %1031 = vsyncpa [#allocation3], 1 }
 0x1e6   :  { %1033 = vsyncpa [#allocation3 + $0x1], 1 }
 0x1e7   :  { %1034 = vsyncpa [#allocation6], 1 }
 0x1e8   :  { %1035 = vsyncpa [#allocation4], 1 }
 0x1e9   :  { %1037 = vsyncpa [#allocation4 + $0x1], 1 }
 0x1ea   :  { %1038 = vsyncpa [#allocation9], 1 }
 0x1eb   :  { %1040 = vsyncpa [#allocation9 + $0x1], 1 }

</bundles_post_ra>
